<compile_context>
chip_gen: v5e
topology: v5e:2x2
jax: 0.10.0
libtpu: 0.0.40
codegen_flags: <defaults>
</compile_context>

<pallas_src>
import functools

import jax
import jax.numpy as jnp
from jax.experimental import pallas as pl
from jax.experimental.pallas import tpu as pltpu


# --------------------- Stage 1: per-token log-prob table (one shot) ---------------------
def logprob_table_kernel(emb_ref, w_ref, b_ref, out_ref):
    """lp_table = log_softmax(emb_table @ W_eo + b) over the last dim.

    emb_ref: (NT, E)  w_ref: (E, O)  b_ref: (1, O)  out_ref: (NT, O), all f32 in VMEM.
    """
    logits = jnp.dot(emb_ref[...], w_ref[...],
                     preferred_element_type=jnp.float32) + b_ref[...]
    m = jnp.max(logits, axis=-1, keepdims=True)                   # XLU lane reduction
    z = logits - m
    lse = jnp.log(jnp.sum(jnp.exp(z), axis=-1, keepdims=True))    # exp/log -> EUP
    out_ref[...] = z - lse


# --------------------- Stage 2: streaming packed gather (gridded) -----------------------
def gather_logprobs_kernel(idx_ref, table_ref, out_ref):
    """Row-gather of the packed log-prob table via a one-hot MXU matmul.

    idx_ref:   (TT4, pack) int32 -- token ids, pre-offset by g*NT for lane group g
    table_ref: (pack*NT, pack*O) f32 block-diagonal log-prob table
    out_ref:   (TT4, pack*O) f32 lane-dense output tile (pack*O == 128 when 128 % O == 0)
    """
    tt4 = out_ref.shape[0]
    ncols = table_ref.shape[0]          # pack * NT
    pack = idx_ref.shape[1]

    idx = idx_ref[...]                                            # (TT4, pack)
    col = jax.lax.broadcasted_iota(jnp.int32, (tt4, ncols), 1)    # column index j
    match = col == idx[:, 0:1]
    for g in range(1, pack):            # static unroll; pack <= 4 compares (VPU)
        match = match | (col == idx[:, g:g + 1])
    onehot = match.astype(jnp.float32)  # exactly `pack` ones per row, one per lane group
    # Block-diagonal table => each output element receives exactly one nonzero product.
    out_ref[...] = jnp.dot(onehot, table_ref[...],
                           preferred_element_type=jnp.float32)


@functools.partial(jax.jit, static_argnames=("token_tile",))
def mapping_ctc_predictor_forward(indices, emb_table, proj_weight, proj_bias,
                                  features_len=None, *, token_tile=2048):
    """Forward pass of MappingCTCPredictor.

    indices:     (B, T) int   token ids into the discrete bottleneck codebook
    emb_table:   (num_tokens, E) float  -- nn.Embedding.weight
    proj_weight: (O, E) float           -- nn.Linear.weight (torch layout)
    proj_bias:   (O,)  float            -- nn.Linear.bias
    Returns (log_probs of shape (B, T, O) float32, features_len).
    """
    B, T = indices.shape
    NT, E = emb_table.shape
    O = proj_weight.shape[0]

    emb = emb_table.astype(jnp.float32)                        # (NT, E)
    w_eo = jnp.transpose(proj_weight).astype(jnp.float32)      # (E, O)
    b = proj_bias.reshape(1, O).astype(jnp.float32)            # (1, O)

    # ---- Stage 1: per-token log-prob table (tiny, runs once, fully VMEM resident) ----
    lp_table = pl.pallas_call(
        logprob_table_kernel,
        out_shape=jax.ShapeDtypeStruct((NT, O), jnp.float32),
        in_specs=[pl.BlockSpec(memory_space=pltpu.MemorySpace.VMEM) for _ in range(3)],
        out_specs=pl.BlockSpec(memory_space=pltpu.MemorySpace.VMEM),
    )(emb, w_eo, b)

    # Lane packing: put `pack` token rows side-by-side so each output row fills 128 lanes.
    pack = 128 // O if (O < 128 and 128 % O == 0) else 1

    # Block-diagonal packed table (tiny): table_packed[g*NT + n, g*O:(g+1)*O] = lp_table[n].
    if pack > 1:
        table_packed = jnp.kron(jnp.eye(pack, dtype=jnp.float32), lp_table)  # (pack*NT, 128)
    else:
        table_packed = lp_table

    # ---- Tile / grid selection ----
    N = B * T
    min_tile = 8 * pack                      # tile//pack must be a multiple of 8 (sublanes)
    tile = max(min_tile, (token_tile // min_tile) * min_tile)
    # Shrink for small inputs so padding stays bounded.
    while tile > min_tile and (tile // 2) % min_tile == 0 and (tile // 2) >= N:
        tile //= 2
    # Keep >= 2 grid steps when there is enough work so "parallel" feeds both v7x TensorCores.
    if (pl.cdiv(N, tile) == 1 and N > min_tile
            and tile // 2 >= min_tile and (tile // 2) % min_tile == 0):
        tile //= 2
    n_tiles = pl.cdiv(N, tile)
    n_pad = n_tiles * tile
    tt4 = tile // pack

    # ---- Index prep (tiny int32 work in XLA): flatten, pad, group by `pack`, pre-offset ----
    idx = indices.reshape(N).astype(jnp.int32)
    idx = jnp.pad(idx, (0, n_pad - N))                           # pad with token 0 (discarded)
    idx = idx.reshape(n_pad // pack, pack)
    idx = idx + (jnp.arange(pack, dtype=jnp.int32) * NT)[None, :]  # column offset per lane group

    # VMEM footprint at tile=2048: idx ~256 KiB x2 + packed table ~128 KiB x1 + out ~256 KiB x2;
    # comfortably inside the default scoped VMEM limit on v5e/v6e/v7x.  Re-derive (and set
    # vmem_limit_bytes) if token_tile is pushed towards 8192 with a production-size codebook.
    out_packed = pl.pallas_call(
        gather_logprobs_kernel,
        out_shape=jax.ShapeDtypeStruct((n_pad // pack, pack * O), jnp.float32),
        grid=(n_tiles,),
        in_specs=[
            # Contiguous, lane-grouped index tile.
            pl.BlockSpec((tt4, pack), lambda i: (i, 0)),
            # Invariant table: constant block index -> single-buffer it (no 2nd copy in VMEM).
            pl.BlockSpec((pack * NT, pack * O), lambda i: (0, 0),
                         pipeline_mode=pl.Buffered(1)),
        ],
        # Lane-dense output tile: pack*O == 128 -> unmasked full-width vector stores.
        out_specs=pl.BlockSpec((tt4, pack * O), lambda i: (i, 0)),
        compiler_params=pltpu.CompilerParams(
            dimension_semantics=("parallel",)),    # megacore on v7x, harmless on v5e/v6e
    )(idx, table_packed)

    # (n_pad//pack, pack*O) row-major is byte-identical to (n_pad, O): zero-cost reshape.
    log_probs = out_packed.reshape(n_pad, O)[:N].reshape(B, T, O)
    return log_probs, features_len


def _reference_forward(indices, emb_table, proj_weight, proj_bias, features_len=None):
    """Pure-JAX reference mirroring the PyTorch forward."""
    emb = emb_table[indices]                                       # (B, T, E)
    logits = jnp.einsum('bte,oe->bto', emb, proj_weight,
                        precision=jax.lax.Precision.HIGHEST) + proj_bias[None, None, :]
    return jax.nn.log_softmax(logits, axis=-1), features_len


if __name__ == "__main__":
    # Small shapes consistent with the module: B=2, T=16, num_tokens=64, emb_size=128, O=32.
    B, T = 2, 16
    num_tokens, emb_size, output_dim = 64, 128, 32

    key = jax.random.PRNGKey(0)
    k_idx, k_emb, k_w, k_b = jax.random.split(key, 4)

    indices = jax.random.randint(k_idx, (B, T), 0, num_tokens, dtype=jnp.int32)
    features_len = jnp.array([T, T - 5], dtype=jnp.int32)

    # nn.Embedding init ~ N(0, 1); nn.Linear init ~ U(-1/sqrt(fan_in), 1/sqrt(fan_in)).
    emb_table = jax.random.normal(k_emb, (num_tokens, emb_size), dtype=jnp.float32)
    bound = 1.0 / (emb_size ** 0.5)
    proj_weight = jax.random.uniform(k_w, (output_dim, emb_size),
                                     minval=-bound, maxval=bound, dtype=jnp.float32)
    proj_bias = jax.random.uniform(k_b, (output_dim,),
                                   minval=-bound, maxval=bound, dtype=jnp.float32)

    log_probs, out_len = mapping_ctc_predictor_forward(
        indices, emb_table, proj_weight, proj_bias, features_len)
    log_probs = jax.block_until_ready(log_probs)

    ref_lp, _ = _reference_forward(indices, emb_table, proj_weight, proj_bias, features_len)

    assert log_probs.shape == (B, T, output_dim)
    assert jnp.allclose(log_probs, ref_lp, atol=1e-4, rtol=1e-4), "mismatch vs. reference"
    # log-softmax rows must exponentiate to (approximately) normalized distributions
    assert jnp.allclose(jnp.sum(jnp.exp(log_probs), axis=-1), 1.0, atol=1e-4)
    assert jnp.array_equal(out_len, features_len)

    print("KERNEL_OK")
</pallas_src>

<mosaic_0001>
module attributes {stable_mosaic.version = 11 : i64} {
  func.func @logprob_table_kernel(%arg0: memref<64x128xf32, #tpu.memory_space<vmem>>, %arg1: memref<128x32xf32, #tpu.memory_space<vmem>>, %arg2: memref<1x32xf32, #tpu.memory_space<vmem>>, %arg3: memref<64x32xf32, #tpu.memory_space<vmem>>) attributes {dimension_semantics = [], scalar_prefetch = 0 : i64, scratch_operands = 0 : i64, tpu.core_type = #tpu.core_type<tc>} {
    %c0 = arith.constant 0 : index
    %c0_0 = arith.constant 0 : index
    %0 = vector.load %arg0[%c0, %c0_0] : memref<64x128xf32, #tpu.memory_space<vmem>>, vector<64x128xf32>
    %c0_1 = arith.constant 0 : index
    %c0_2 = arith.constant 0 : index
    %1 = vector.load %arg1[%c0_1, %c0_2] : memref<128x32xf32, #tpu.memory_space<vmem>>, vector<128x32xf32>
    %cst = arith.constant dense<0.000000e+00> : vector<64x32xf32>
    %2 = tpu.matmul %0, %1, %cst {dimension_numbers = #tpu.dot_dimension_numbers<[1], [0], [0], [1], [0, 0, 1, 1], [], []>} : vector<64x128xf32>, vector<128x32xf32>, vector<64x32xf32> -> vector<64x32xf32>
    %c0_3 = arith.constant 0 : index
    %c0_4 = arith.constant 0 : index
    %3 = vector.load %arg2[%c0_3, %c0_4] : memref<1x32xf32, #tpu.memory_space<vmem>>, vector<1x32xf32>
    %4 = vector.broadcast %3 : vector<1x32xf32> to vector<64x32xf32>
    %5 = arith.addf %2, %4 : vector<64x32xf32>
    %cst_5 = arith.constant dense<0xFF800000> : vector<64xf32>
    %6 = vector.multi_reduction <maximumf>, %5, %cst_5 [1] : vector<64x32xf32> to vector<64xf32>
    %7 = vector.shape_cast %6 : vector<64xf32> to vector<64x1xf32>
    %8 = vector.broadcast %7 : vector<64x1xf32> to vector<64x32xf32>
    %9 = arith.subf %5, %8 : vector<64x32xf32>
    %10 = math.exp %9 : vector<64x32xf32>
    %cst_6 = arith.constant dense<0.000000e+00> : vector<64xf32>
    %11 = vector.multi_reduction <add>, %10, %cst_6 [1] : vector<64x32xf32> to vector<64xf32>
    %12 = vector.shape_cast %11 : vector<64xf32> to vector<64x1xf32>
    %13 = math.log %12 : vector<64x1xf32>
    %14 = vector.broadcast %13 : vector<64x1xf32> to vector<64x32xf32>
    %15 = arith.subf %9, %14 : vector<64x32xf32>
    %c0_7 = arith.constant 0 : index
    %c0_8 = arith.constant 0 : index
    %16 = vector.load %arg3[%c0_7, %c0_8] : memref<64x32xf32, #tpu.memory_space<vmem>>, vector<64x32xf32>
    tpu.vector_store %arg3[%c0_7, %c0_8], %15 {strides = array<i32>} : memref<64x32xf32, #tpu.memory_space<vmem>>, vector<64x32xf32>,
    return
  }
}

module attributes {stable_mosaic.version = 11 : i64} {
  func.func @gather_logprobs_kernel(%arg0: i32, %arg1: memref<8x4xi32, #tpu.memory_space<vmem>>, %arg2: memref<256x128xf32, #tpu.memory_space<vmem>>, %arg3: memref<8x128xf32, #tpu.memory_space<vmem>>) attributes {dimension_semantics = [#tpu.dimension_semantics<parallel>], iteration_bounds = array<i64: 1>, scalar_prefetch = 0 : i64, scratch_operands = 0 : i64, tpu.core_type = #tpu.core_type<tc>, window_params = [{transform_indices = @transform_0, window_bounds = array<i64: 8, 4>}, {pipeline_mode = #tpu.pipeline_mode<synchronous>, transform_indices = @transform_1, window_bounds = array<i64: 256, 128>}, {transform_indices = @transform_2, window_bounds = array<i64: 8, 128>}]} {
    %c0 = arith.constant 0 : index
    %c0_0 = arith.constant 0 : index
    %0 = vector.load %arg1[%c0, %c0_0] : memref<8x4xi32, #tpu.memory_space<vmem>>, vector<8x4xi32>
    %1 = tpu.iota {dimensions = array<i32: 1>} : vector<8x256xi32>
    %2 = vector.extract_strided_slice %0 {offsets = [0, 0], sizes = [8, 1], strides = [1, 1]} : vector<8x4xi32> to vector<8x1xi32>
    %3 = vector.broadcast %2 : vector<8x1xi32> to vector<8x256xi32>
    %4 = arith.cmpi eq, %1, %3 : vector<8x256xi32>
    %5 = vector.extract_strided_slice %0 {offsets = [0, 1], sizes = [8, 1], strides = [1, 1]} : vector<8x4xi32> to vector<8x1xi32>
    %6 = vector.broadcast %5 : vector<8x1xi32> to vector<8x256xi32>
    %7 = arith.cmpi eq, %1, %6 : vector<8x256xi32>
    %8 = arith.ori %4, %7 : vector<8x256xi1>
    %9 = vector.extract_strided_slice %0 {offsets = [0, 2], sizes = [8, 1], strides = [1, 1]} : vector<8x4xi32> to vector<8x1xi32>
    %10 = vector.broadcast %9 : vector<8x1xi32> to vector<8x256xi32>
    %11 = arith.cmpi eq, %1, %10 : vector<8x256xi32>
    %12 = arith.ori %8, %11 : vector<8x256xi1>
    %13 = vector.extract_strided_slice %0 {offsets = [0, 3], sizes = [8, 1], strides = [1, 1]} : vector<8x4xi32> to vector<8x1xi32>
    %14 = vector.broadcast %13 : vector<8x1xi32> to vector<8x256xi32>
    %15 = arith.cmpi eq, %1, %14 : vector<8x256xi32>
    %16 = arith.ori %12, %15 : vector<8x256xi1>
    %17 = arith.extui %16 : vector<8x256xi1> to vector<8x256xi32>
    %18 = arith.sitofp %17 : vector<8x256xi32> to vector<8x256xf32>
    %c0_1 = arith.constant 0 : index
    %c0_2 = arith.constant 0 : index
    %19 = vector.load %arg2[%c0_1, %c0_2] : memref<256x128xf32, #tpu.memory_space<vmem>>, vector<256x128xf32>
    %cst = arith.constant dense<0.000000e+00> : vector<8x128xf32>
    %20 = tpu.matmul %18, %19, %cst {dimension_numbers = #tpu.dot_dimension_numbers<[1], [0], [0], [1], [0, 0, 1, 1], [], []>} : vector<8x256xf32>, vector<256x128xf32>, vector<8x128xf32> -> vector<8x128xf32>
    %c0_3 = arith.constant 0 : index
    %c0_4 = arith.constant 0 : index
    %21 = vector.load %arg3[%c0_3, %c0_4] : memref<8x128xf32, #tpu.memory_space<vmem>>, vector<8x128xf32>
    tpu.vector_store %arg3[%c0_3, %c0_4], %20 {strides = array<i32>} : memref<8x128xf32, #tpu.memory_space<vmem>>, vector<8x128xf32>,
    return
  }
  func.func @transform_0(%arg0: i32) -> (i32, i32) {
    %c0_i32 = arith.constant 0 : i32
    %c0_i32_0 = arith.constant 0 : i32
    return %arg0, %c0_i32 : i32, i32
  }
  func.func @transform_1(%arg0: i32) -> (i32, i32) {
    %c0_i32 = arith.constant 0 : i32
    %c0_i32_0 = arith.constant 0 : i32
    %c0_i32_1 = arith.constant 0 : i32
    return %c0_i32, %c0_i32_0 : i32, i32
  }
  func.func @transform_2(%arg0: i32) -> (i32, i32) {
    %c0_i32 = arith.constant 0 : i32
    %c0_i32_0 = arith.constant 0 : i32
    return %arg0, %c0_i32 : i32, i32
  }
}

</mosaic_0001>

<bundles_post_ra>
// kernel: mapping_ctc_predictor_forward.2
= control target key start
LH: loop header
LB: loop body
LE: loop exit
PB: predicated region body
PF: predicated region fallthrough
CT: control target
= control target key end

     0   :  { %vm83_vm0 = vcmask 261120   ;;  %s448_s1 = inlined_call_operand.vmem [shape: f32[128,32], index: 1, kind: input, shape index: {}]   ;;  %s449_s2 = inlined_call_operand.vmem [shape: f32[1,32], index: 2, kind: input, shape index: {}]   ;;  %s450_s0 = inlined_call_operand.vmem [shape: f32[64,128], index: 0, kind: input, shape index: {}]   ;;  %s451_s3 = inlined_call_operand.vmem [shape: f32[64,32], index: 3, kind: output, shape index: {}]  }
   0x1   :  { %v37_v0 = vld [vmem:[%s448_s1 + $0x78] sm:$0xff]  ;;  %v36_v1 = vld [vmem:[%s448_s1 + $0x70] sm:$0xff]  ;;  %v35_v2 = vld [vmem:[%s448_s1 + $0x68] sm:$0xff] }
   0x2   :  { %42 = vmatpush.msra.mxu0 %v37_v0  ;;  %192 = vmatpush.msra.mxu1 %v37_v0  ;;  %v34_v3 = vld [vmem:[%s448_s1 + $0x60] sm:$0xff]  ;;  %v33_v4 = vld [vmem:[%s448_s1 + $0x58] sm:$0xff]  ;;  %v32_v5 = vld [vmem:[%s448_s1 + $0x50] sm:$0xff] }
   0x3   :  { %193 = vmatpush.msra.mxu2 %v37_v0  ;;  %194 = vmatpush.msra.mxu3 %v37_v0  ;;  %v31_v6 = vld [vmem:[%s448_s1 + $0x48] sm:$0xff]  ;;  %v30_v7 = vld [vmem:[%s448_s1 + $0x40] sm:$0xff]  ;;  %v29_v8 = vld [vmem:[%s448_s1 + $0x38] sm:$0xff] }
   0x4   :  { %43 = vmatpush.msra.mxu0 %v36_v1  ;;  %195 = vmatpush.msra.mxu1 %v36_v1  ;;  %v28_v9 = vld [vmem:[%s448_s1 + $0x30] sm:$0xff]  ;;  %v27_v10 = vld [vmem:[%s448_s1 + $0x28] sm:$0xff]  ;;  %v26_v11 = vld [vmem:[%s448_s1 + $0x20] sm:$0xff] }
   0x5   :  { %196 = vmatpush.msra.mxu2 %v36_v1  ;;  %197 = vmatpush.msra.mxu3 %v36_v1  ;;  %v25_v12 = vld [vmem:[%s448_s1 + $0x18] sm:$0xff]  ;;  %v24_v13 = vld [vmem:[%s448_s1 + $0x10] sm:$0xff]  ;;  %v23_v14 = vld [vmem:[%s448_s1 + $0x8] sm:$0xff] }
   0x6   :  { %44 = vmatpush.msra.mxu0 %v35_v2  ;;  %198 = vmatpush.msra.mxu1 %v35_v2  ;;  %v22_v15 = vld [vmem:[%s448_s1] sm:$0xff]  ;;  %v16_v17 = vld [vmem:[%s450_s0 + $0x10] sm:$0xff]  ;;  %v15_v20 = vld [vmem:[%s450_s0 + $0x8] sm:$0xff] }
   0x7   :  { %199 = vmatpush.msra.mxu2 %v35_v2  ;;  %200 = vmatpush.msra.mxu3 %v35_v2  ;;  %v14_v16 = vld [vmem:[%s450_s0] sm:$0xff]  ;;  %v20_v19 = vld [vmem:[%s450_s0 + $0x30] sm:$0xff]  ;;  %v17_v21 = vld [vmem:[%s450_s0 + $0x18] sm:$0xff] }
   0x8   :  { %45 = vmatpush.msra.mxu0 %v34_v3  ;;  %201 = vmatpush.msra.mxu1 %v34_v3  ;;  %v18_v18 = vld [vmem:[%s450_s0 + $0x20] sm:$0xff]  ;;  %v19_v22 = vld [vmem:[%s450_s0 + $0x28] sm:$0xff]  ;;  %v21_v23 = vld [vmem:[%s450_s0 + $0x38] sm:$0xff] }
   0x9   :  { %202 = vmatpush.msra.mxu2 %v34_v3  ;;  %203 = vmatpush.msra.mxu3 %v34_v3  ;;  %v240_v24 = vld [vmem:[%s449_s2] ss:$0 sm:$0xff] }
   0xa   :  { %46 = vmatpush.msra.mxu0 %v33_v4  ;;  %204 = vmatpush.msra.mxu1 %v33_v4 }
   0xb   :  { %205 = vmatpush.msra.mxu2 %v33_v4  ;;  %206 = vmatpush.msra.mxu3 %v33_v4 }
   0xc   :  { %47 = vmatpush.msra.mxu0 %v32_v5  ;;  %207 = vmatpush.msra.mxu1 %v32_v5 }
   0xd   :  { %208 = vmatpush.msra.mxu2 %v32_v5  ;;  %209 = vmatpush.msra.mxu3 %v32_v5 }
   0xe   :  { %48 = vmatpush.msra.mxu0 %v31_v6  ;;  %210 = vmatpush.msra.mxu1 %v31_v6 }
   0xf   :  { %211 = vmatpush.msra.mxu2 %v31_v6  ;;  %212 = vmatpush.msra.mxu3 %v31_v6 }
  0x10   :  { %49 = vmatpush.msra.mxu0 %v30_v7  ;;  %213 = vmatpush.msra.mxu1 %v30_v7 }
  0x11   :  { %214 = vmatpush.msra.mxu2 %v30_v7  ;;  %215 = vmatpush.msra.mxu3 %v30_v7 }
  0x12   :  { %50 = vmatpush.msra.mxu0 %v29_v8  ;;  %216 = vmatpush.msra.mxu1 %v29_v8 }
  0x13   :  { %217 = vmatpush.msra.mxu2 %v29_v8  ;;  %218 = vmatpush.msra.mxu3 %v29_v8 }
  0x14   :  { %51 = vmatpush.msra.mxu0 %v28_v9  ;;  %219 = vmatpush.msra.mxu1 %v28_v9 }
  0x15   :  { %220 = vmatpush.msra.mxu2 %v28_v9  ;;  %221 = vmatpush.msra.mxu3 %v28_v9 }
  0x16   :  { %52 = vmatpush.msra.mxu0 %v27_v10  ;;  %222 = vmatpush.msra.mxu1 %v27_v10 }
  0x17   :  { %223 = vmatpush.msra.mxu2 %v27_v10  ;;  %224 = vmatpush.msra.mxu3 %v27_v10 }
  0x18   :  { %53 = vmatpush.msra.mxu0 %v26_v11  ;;  %225 = vmatpush.msra.mxu1 %v26_v11 }
  0x19   :  { %226 = vmatpush.msra.mxu2 %v26_v11  ;;  %227 = vmatpush.msra.mxu3 %v26_v11 }
  0x1a   :  { %54 = vmatpush.msra.mxu0 %v25_v12  ;;  %228 = vmatpush.msra.mxu1 %v25_v12 }
  0x1b   :  { %229 = vmatpush.msra.mxu2 %v25_v12  ;;  %230 = vmatpush.msra.mxu3 %v25_v12 }
  0x1c   :  { %55 = vmatpush.msra.mxu0 %v24_v13  ;;  %231 = vmatpush.msra.mxu1 %v24_v13 }
  0x1d   :  { %232 = vmatpush.msra.mxu2 %v24_v13  ;;  %233 = vmatpush.msra.mxu3 %v24_v13 }
  0x1e   :  { %56 = vmatpush.msra.mxu0 %v23_v14  ;;  %234 = vmatpush.msra.mxu1 %v23_v14 }
  0x1f   :  { %235 = vmatpush.msra.mxu2 %v23_v14  ;;  %236 = vmatpush.msra.mxu3 %v23_v14 }
  0x20   :  { %57 = vmatpush.msra.mxu0 %v22_v15  ;;  %237 = vmatpush.msra.mxu1 %v22_v15 }
  0x21   :  { %238 = vmatpush.msra.mxu2 %v22_v15  ;;  %58 = vmatmul.f32.vlgmr.msra.gmra.mxu0 %v14_v16 }
  0x22   :  { %64 = vmatmul.f32.vlgmr.msra.gmra.mxu1 %v16_v17  ;;  %70 = vmatmul.f32.vlgmr.msra.gmra.mxu2 %v18_v18 }
  0x23   :  { %239 = vmatpush.msra.mxu3 %v22_v15 }
  0x24   :  { %76 = vmatmul.f32.vlgmr.msra.gmra.mxu3 %v20_v19 }
  0x29   :  { %61 = vmatmul.f32.gmra.mxu0 %v15_v20 }
  0x2a   :  { %67 = vmatmul.f32.gmra.mxu1 %v17_v21  ;;  %73 = vmatmul.f32.gmra.mxu2 %v19_v22 }
  0x2c   :  { %79 = vmatmul.f32.gmra.mxu3 %v21_v23 }
  0x9e   :  { %v59_v25 = vpop.f32.mrf.mxu0 }
  0x9f   :  { %v60_v26 = vadd.f32 %v240_v24, %v59_v25  ;;  %v65_v27 = vpop.f32.mrf.mxu1 }
  0xa0   :  { %v66_v28 = vadd.f32 %v240_v24, %v65_v27 }
  0xa1   :  { %v84_v29 = vsel %vm83_vm0, %v60_v26, -inf }
  0xa2   :  { %v90_v30 = vsel %vm83_vm0, %v66_v28, -inf  ;;  %85 = vmax.xlane.f32.xlu0 %v84_v29 }
  0xa3   :  { %91 = vmax.xlane.f32.xlu1 %v90_v30 }
  0xa5   :  { %v71_v31 = vpop.f32.mrf.mxu2 }
  0xa6   :  { %v72_v32 = vadd.f32 %v240_v24, %v71_v31  ;;  %v62_v33 = vpop.f32.mrf.mxu0 }
  0xa7   :  { %v63_v34 = vadd.f32 %v240_v24, %v62_v33  ;;  %v68_v35 = vpop.f32.mrf.mxu1  ;;  %v77_v36 = vpop.f32.mrf.mxu3 }
  0xa8   :  { %v69_v37 = vadd.f32 %v240_v24, %v68_v35  ;;  %v96_v38 = vsel %vm83_vm0, %v72_v32, -inf  ;;  %v78_v41 = vadd.f32 %v240_v24, %v77_v36 }
  0xa9   :  { %97 = vmax.xlane.f32.xlu2 %v96_v38  ;;  %v87_v39 = vsel %vm83_vm0, %v63_v34, -inf }
  0xaa   :  { %v93_v40 = vsel %vm83_vm0, %v69_v37, -inf  ;;  %88 = vmax.xlane.f32.xlu0 %v87_v39  ;;  %v102_v47 = vsel %vm83_vm0, %v78_v41, -inf }
  0xab   :  { %94 = vmax.xlane.f32.xlu1 %v93_v40 }
  0xad   :  { %v74_v42 = vpop.f32.mrf.mxu2 }
  0xae   :  { %v75_v43 = vadd.f32 %v240_v24, %v74_v42 }
  0xaf   :  { %v80_v44 = vpop.f32.mrf.mxu3 }
  0xb0   :  { %v81_v45 = vadd.f32 %v240_v24, %v80_v44  ;;  %v99_v46 = vsel %vm83_vm0, %v75_v43, -inf }
  0xb1   :  { %100 = vmax.xlane.f32.xlu2 %v99_v46 }
  0xb2   :  { %v105_v48 = vsel %vm83_vm0, %v81_v45, -inf  ;;  %103 = vmax.xlane.f32.xlu0 %v102_v47 }
  0xb3   :  { %106 = vmax.xlane.f32.xlu1 %v105_v48 }
 0x115   :  { %v86_v49 = vpop.xlane.xlu0 %85 }
 0x116   :  { %v92_v50 = vpop.xlane.xlu1 %91  ;;  %v376_v51 = vsub.f32 %v60_v26, %v86_v49 }
 0x117   :  { %v378_v52 = vsub.f32 %v66_v28, %v92_v50 }
 0x118   :  { %v116_v53 = vmul.f32 1.442695, %v376_v51 }
 0x119   :  { %v120_v54 = vmul.f32 1.442695, %v378_v52 }
 0x11a   :  { %241 = vpow2.f32 %v116_v53 }
 0x11b   :  { %243 = vpow2.f32 %v120_v54 }
 0x11c   :  { %v98_v55 = vpop.xlane.xlu2 %97 }
 0x11d   :  { %v382_v56 = vsub.f32 %v72_v32, %v98_v55  ;;  %v89_v57 = vpop.xlane.xlu0 %88 }
 0x11e   :  { %v95_v58 = vpop.xlane.xlu1 %94  ;;  %v387_v61 = vsub.f32 %v63_v34, %v89_v57 }
 0x11f   :  { %v124_v59 = vmul.f32 1.442695, %v382_v56  ;;  %v385_v60 = vsub.f32 %v69_v37, %v95_v58 }
 0x120   :  { %v242_v62 = vpop.eup %241  ;;  %v118_v3 = vmul.f32 1.442695, %v387_v61 }
 0x121   :  { %v244_v63 = vpop.eup %243  ;;  %245 = vpow2.f32 %v124_v59  ;;  %v122_v0 = vmul.f32 1.442695, %v385_v60  ;;  %v132_v1 = vsel %vm83_vm0, %v242_v62, 0.0 }
 0x122   :  { %v138_v2 = vsel %vm83_vm0, %v244_v63, 0.0  ;;  %133 = vadd.xlane.f32.xlu2 %v132_v1 }
 0x123   :  { %247 = vpow2.f32 %v122_v0  ;;  %139 = vadd.xlane.f32.xlu1 %v138_v2 }
 0x124   :  { %v101_v4 = vpop.xlane.xlu2 %100  ;;  %249 = vpow2.f32 %v118_v3 }
 0x125   :  { %v393_v5 = vsub.f32 %v75_v43, %v101_v4  ;;  %v104_v6 = vpop.xlane.xlu0 %103 }
 0x126   :  { %v107_v7 = vpop.xlane.xlu1 %106  ;;  %v395_v8 = vsub.f32 %v78_v41, %v104_v6 }
 0x127   :  { %v246_v9 = vpop.eup %245  ;;  %v126_v10 = vmul.f32 1.442695, %v393_v5  ;;  %v398_v11 = vsub.f32 %v81_v45, %v107_v7 }
 0x128   :  { %v128_v12 = vmul.f32 1.442695, %v395_v8  ;;  %v144_v13 = vsel %vm83_vm0, %v246_v9, 0.0 }
 0x129   :  { %v248_v14 = vpop.eup %247  ;;  %251 = vpow2.f32 %v126_v10  ;;  %145 = vadd.xlane.f32.xlu0 %v144_v13  ;;  %v130_v16 = vmul.f32 1.442695, %v398_v11 }
 0x12a   :  { %253 = vpow2.f32 %v128_v12  ;;  %v141_v15 = vsel %vm83_vm0, %v248_v14, 0.0  ;;  %v250_v17 = vpop.eup %249 }
 0x12b   :  { %142 = vadd.xlane.f32.xlu2 %v141_v15  ;;  %255 = vpow2.f32 %v130_v16  ;;  %v135_v21 = vsel %vm83_vm0, %v250_v17, 0.0 }
 0x12f   :  { %v252_v18 = vpop.eup %251 }
 0x130   :  { %v254_v19 = vpop.eup %253  ;;  %v147_v20 = vsel %vm83_vm0, %v252_v18, 0.0 }
 0x131   :  { %148 = vadd.xlane.f32.xlu1 %v147_v20  ;;  %136 = vadd.xlane.f32.xlu0 %v135_v21  ;;  %v150_v22 = vsel %vm83_vm0, %v254_v19, 0.0  ;;  %v256_v23 = vpop.eup %255 }
 0x132   :  { %v153_v24 = vsel %vm83_vm0, %v256_v23, 0.0 }
 0x133   :  { %151 = vadd.xlane.f32.xlu2 %v150_v22 }
 0x139   :  { %154 = vadd.xlane.f32.xlu0 %v153_v24 }
 0x195   :  { %v134_v25 = vpop.xlane.xlu2 %133 }
 0x196   :  { %v140_v26 = vpop.xlane.xlu1 %139  ;;  %257 = vlog2.f32 %v134_v25 }
 0x197   :  { %259 = vlog2.f32 %v140_v26 }
 0x19c   :  { %v258_v27 = vpop.eup %257  ;;  %v146_v28 = vpop.xlane.xlu0 %145 }
 0x19d   :  { %v260_v29 = vpop.eup %259  ;;  %v157_v30 = vmul.f32 0.6931472, %v258_v27  ;;  %261 = vlog2.f32 %v146_v28 }
 0x19e   :  { %v161_v31 = vmul.f32 0.6931472, %v260_v29  ;;  %v143_v32 = vpop.xlane.xlu2 %142 }
 0x19f   :  { %v172_v33 = vsub.f32 %v376_v51, %v157_v30  ;;  %263 = vlog2.f32 %v143_v32 }
 0x1a0   :  { %v174_v34 = vsub.f32 %v378_v52, %v161_v31 }
 0x1a1   :  { %180 = vst.msk [vmem:[%s451_s3] sm:$0xff] %vm83_vm0, %v172_v33 }
 0x1a2   :  { %182 = vst.msk [vmem:[%s451_s3 + $0x10] sm:$0xff] %vm83_vm0, %v174_v34 }
 0x1a3   :  { %v262_v35 = vpop.eup %261 }
 0x1a4   :  { %v165_v36 = vmul.f32 0.6931472, %v262_v35  ;;  %v149_v37 = vpop.xlane.xlu1 %148  ;;  %v137_v38 = vpop.xlane.xlu0 %136 }
 0x1a5   :  { %v264_v39 = vpop.eup %263  ;;  %265 = vlog2.f32 %v149_v37 }
 0x1a6   :  { %v176_v40 = vsub.f32 %v382_v56, %v165_v36  ;;  %v163_v41 = vmul.f32 0.6931472, %v264_v39  ;;  %267 = vlog2.f32 %v137_v38  ;;  %v152_v42 = vpop.xlane.xlu2 %151 }
 0x1a7   :  { %269 = vlog2.f32 %v152_v42 }
 0x1a8   :  { %184 = vst.msk [vmem:[%s451_s3 + $0x20] sm:$0xff] %vm83_vm0, %v176_v40  ;;  %v175_v43 = vsub.f32 %v385_v60, %v163_v41 }
 0x1aa   :  { %183 = vst.msk [vmem:[%s451_s3 + $0x18] sm:$0xff] %vm83_vm0, %v175_v43 }
 0x1ab   :  { %v266_v44 = vpop.eup %265 }
 0x1ac   :  { %v268_v45 = vpop.eup %267  ;;  %v167_v46 = vmul.f32 0.6931472, %v266_v44  ;;  %v155_v47 = vpop.xlane.xlu0 %154 }
 0x1ad   :  { %v270_v48 = vpop.eup %269  ;;  %v159_v49 = vmul.f32 0.6931472, %v268_v45  ;;  %271 = vlog2.f32 %v155_v47 }
 0x1ae   :  { %v177_v50 = vsub.f32 %v393_v5, %v167_v46  ;;  %v169_v51 = vmul.f32 0.6931472, %v270_v48 }
 0x1af   :  { %v173_v52 = vsub.f32 %v387_v61, %v159_v49 }
 0x1b0   :  { %185 = vst.msk [vmem:[%s451_s3 + $0x28] sm:$0xff] %vm83_vm0, %v177_v50  ;;  %v178_v53 = vsub.f32 %v395_v8, %v169_v51 }
 0x1b1   :  { %181 = vst.msk [vmem:[%s451_s3 + $0x8] sm:$0xff] %vm83_vm0, %v173_v52 }
 0x1b2   :  { %186 = vst.msk [vmem:[%s451_s3 + $0x30] sm:$0xff] %vm83_vm0, %v178_v53 }
 0x1b3   :  { %v272_v54 = vpop.eup %271 }
 0x1b4   :  { %v171_v55 = vmul.f32 0.6931472, %v272_v54 }
 0x1b6   :  { %v179_v56 = vsub.f32 %v398_v11, %v171_v55 }
 0x1b8   :  { %187 = vst.msk [vmem:[%s451_s3 + $0x38] sm:$0xff] %vm83_vm0, %v179_v56 }

// kernel: mapping_ctc_predictor_forward.3
= control target key start
LH: loop header
LB: loop body
LE: loop exit
PB: predicated region body
PF: predicated region fallthrough
CT: control target
= control target key end

     0   :  { %v136_v0 = vmov 0   ;;  %v137_v2 = vmov 2   ;;  %v138_v13 = vmov 1   ;;  %v139_v14 = vmov 3   ;;  %s258_s0 = inlined_call_operand.vmem [shape: s32[8,4], index: 0, kind: input, shape index: {}]   ;;  %s259_s1 = inlined_call_operand.vmem [shape: f32[256,128], index: 1, kind: input, shape index: {}]   ;;  %s260_s2 = inlined_call_operand.vmem [shape: f32[8,128], index: 2, kind: output, shape index: {}]  }
   0x1   :  { %131 = vset.pattern.permute.xlu0 %v136_v0  ;;  %v11_v1 = vld [vmem:[%s258_s0] sm:$0xff]  ;;  %133 = vset.pattern.permute.xlu1 %v137_v2  ;;  %v60_v3 = vld [vmem:[%s259_s1 + $0x78] sm:$0xff]  ;;  %v59_v5 = vld [vmem:[%s259_s1 + $0x70] sm:$0xff]  ;;  %v12_v37 = vlaneseq  ;;  %v140_v44 = vmov 1.0  }
   0x2   :  { %v76_v4 = vld [vmem:[%s259_s1 + $0xf8] sm:$0xff]  ;;  %16 = vperm.xlu0 %131, %v11_v1   ;;  %28 = vperm.xlu1 %133, %v11_v1   ;;  %v75_v6 = vld [vmem:[%s259_s1 + $0xf0] sm:$0xff]  ;;  %v58_v7 = vld [vmem:[%s259_s1 + $0x68] sm:$0xff] }
   0x3   :  { %77 = vmatpush.msra.mxu0 %v60_v3  ;;  %97 = vmatpush.msra.mxu1 %v76_v4  ;;  %v74_v8 = vld [vmem:[%s259_s1 + $0xe8] sm:$0xff]  ;;  %v57_v9 = vld [vmem:[%s259_s1 + $0x60] sm:$0xff]  ;;  %v56_v11 = vld [vmem:[%s259_s1 + $0x58] sm:$0xff]  ;;  %v13_v40 = vand.u32 127, %v12_v37 }
   0x4   :  { %v73_v10 = vld [vmem:[%s259_s1 + $0xe0] sm:$0xff]  ;;  %v72_v12 = vld [vmem:[%s259_s1 + $0xd8] sm:$0xff]  ;;  %v55_v15 = vld [vmem:[%s259_s1 + $0x50] sm:$0xff] }
   0x5   :  { %78 = vmatpush.msra.mxu0 %v59_v5  ;;  %98 = vmatpush.msra.mxu1 %v75_v6  ;;  %v71_v16 = vld [vmem:[%s259_s1 + $0xd0] sm:$0xff]  ;;  %v54_v17 = vld [vmem:[%s259_s1 + $0x48] sm:$0xff]  ;;  %v53_v19 = vld [vmem:[%s259_s1 + $0x40] sm:$0xff]  ;;  %v14_v41 = vadd.s32 128, %v13_v40 }
   0x6   :  { %v70_v18 = vld [vmem:[%s259_s1 + $0xc8] sm:$0xff]  ;;  %v69_v20 = vld [vmem:[%s259_s1 + $0xc0] sm:$0xff]  ;;  %v52_v21 = vld [vmem:[%s259_s1 + $0x38] sm:$0xff] }
   0x7   :  { %79 = vmatpush.msra.mxu0 %v58_v7  ;;  %99 = vmatpush.msra.mxu1 %v74_v8  ;;  %v68_v22 = vld [vmem:[%s259_s1 + $0xb8] sm:$0xff]  ;;  %v51_v23 = vld [vmem:[%s259_s1 + $0x30] sm:$0xff]  ;;  %v50_v25 = vld [vmem:[%s259_s1 + $0x28] sm:$0xff] }
   0x8   :  { %v67_v24 = vld [vmem:[%s259_s1 + $0xb0] sm:$0xff]  ;;  %v66_v26 = vld [vmem:[%s259_s1 + $0xa8] sm:$0xff]  ;;  %v49_v27 = vld [vmem:[%s259_s1 + $0x20] sm:$0xff] }
   0x9   :  { %80 = vmatpush.msra.mxu0 %v57_v9  ;;  %100 = vmatpush.msra.mxu1 %v73_v10  ;;  %v65_v28 = vld [vmem:[%s259_s1 + $0xa0] sm:$0xff]  ;;  %v48_v29 = vld [vmem:[%s259_s1 + $0x18] sm:$0xff]  ;;  %v47_v31 = vld [vmem:[%s259_s1 + $0x10] sm:$0xff] }
   0xa   :  { %132 = vset.pattern.permute.xlu0 %v138_v13  ;;  %134 = vset.pattern.permute.xlu1 %v139_v14  ;;  %v64_v30 = vld [vmem:[%s259_s1 + $0x98] sm:$0xff]  ;;  %v63_v32 = vld [vmem:[%s259_s1 + $0x90] sm:$0xff]  ;;  %v46_v33 = vld [vmem:[%s259_s1 + $0x8] sm:$0xff] }
   0xb   :  { %21 = vperm.xlu0 %132, %v11_v1   ;;  %35 = vperm.xlu1 %134, %v11_v1   ;;  %v62_v34 = vld [vmem:[%s259_s1 + $0x88] sm:$0xff]  ;;  %v45_v35 = vld [vmem:[%s259_s1] sm:$0xff] }
   0xc   :  { %81 = vmatpush.msra.mxu0 %v56_v11  ;;  %101 = vmatpush.msra.mxu1 %v72_v12  ;;  %v61_v36 = vld [vmem:[%s259_s1 + $0x80] sm:$0xff] }
   0xe   :  { %82 = vmatpush.msra.mxu0 %v55_v15  ;;  %102 = vmatpush.msra.mxu1 %v71_v16 }
  0x10   :  { %83 = vmatpush.msra.mxu0 %v54_v17  ;;  %103 = vmatpush.msra.mxu1 %v70_v18 }
  0x12   :  { %84 = vmatpush.msra.mxu0 %v53_v19  ;;  %104 = vmatpush.msra.mxu1 %v69_v20 }
  0x13   :  { %135 = vset.pattern.permute.xlu0 %v139_v14 }
  0x14   :  { %85 = vmatpush.msra.mxu0 %v52_v21  ;;  %105 = vmatpush.msra.mxu1 %v68_v22 }
  0x16   :  { %86 = vmatpush.msra.mxu0 %v51_v23  ;;  %106 = vmatpush.msra.mxu1 %v67_v24 }
  0x18   :  { %87 = vmatpush.msra.mxu0 %v50_v25  ;;  %107 = vmatpush.msra.mxu1 %v66_v26 }
  0x1a   :  { %88 = vmatpush.msra.mxu0 %v49_v27  ;;  %108 = vmatpush.msra.mxu1 %v65_v28 }
  0x1c   :  { %89 = vmatpush.msra.mxu0 %v48_v29  ;;  %109 = vmatpush.msra.mxu1 %v64_v30 }
  0x1e   :  { %90 = vmatpush.msra.mxu0 %v47_v31  ;;  %110 = vmatpush.msra.mxu1 %v63_v32 }
  0x20   :  { %91 = vmatpush.msra.mxu0 %v46_v33  ;;  %111 = vmatpush.msra.mxu1 %v62_v34 }
  0x22   :  { %92 = vmatpush.msra.mxu0 %v45_v35  ;;  %112 = vmatpush.msra.mxu1 %v61_v36 }
  0x74   :  { %v17_v38 = vpop.permute.xlu0 %16  ;;  %v29_v39 = vpop.permute.xlu1 %28 }
  0x75   :  { %vm18_vm0 = vcmp.eq.s32.totalorder %v13_v40, %v17_v38  ;;  %vm19_vm3 = vcmp.eq.s32.totalorder %v14_v41, %v17_v38  ;;  %vm30_vm5 = vcmp.eq.s32.totalorder %v13_v40, %v29_v39  ;;  %vm31_vm8 = vcmp.eq.s32.totalorder %v14_v41, %v29_v39 }
  0x7d   :  { %v22_v42 = vpop.permute.xlu0 %21  ;;  %v36_v43 = vpop.permute.xlu1 %35 }
  0x7e   :  { %vm23_vm1 = vcmp.eq.s32.totalorder %v13_v40, %v22_v42  ;;  %vm24_vm2 = vcmp.eq.s32.totalorder %v14_v41, %v22_v42  ;;  %vm37_vm7 = vcmp.eq.s32.totalorder %v13_v40, %v36_v43  ;;  %vm38_vm10 = vcmp.eq.s32.totalorder %v14_v41, %v36_v43 }
  0x7f   :  { %vm25_vm4 = vmor %vm18_vm0, %vm23_vm1 }
  0x80   :  { %vm26_vm6 = vmor %vm19_vm3, %vm24_vm2 }
  0x81   :  { %vm32_vm9 = vmor %vm25_vm4, %vm30_vm5 }
  0x82   :  { %vm33_vm11 = vmor %vm26_vm6, %vm31_vm8 }
  0x83   :  { %vm39_vm12 = vmor %vm32_vm9, %vm37_vm7 }
  0x84   :  { %vm40_vm13 = vmor %vm33_vm11, %vm38_vm10  ;;  %124 = vmatmul.msk.f32.vlgmr.msra.gmra.mxu0 %vm39_vm12, %v140_v44 }
  0x85   :  { %125 = vmatmul.msk.f32.vlgmr.msra.gmra.mxu1 %vm40_vm13, %v140_v44 }
 0x101   :  { %v94_v45 = vpop.f32.mrf.mxu0 }
 0x102   :  { %v114_v46 = vpop.f32.mrf.mxu1 }
 0x103   :  { %v115_v47 = vadd.f32 %v114_v46, %v94_v45 }
 0x105   :  { %117 = vst [vmem:[%s260_s2] sm:$0xff] %v115_v47 }

</bundles_post_ra>
